<compile_context>
chip_gen: v7x
topology: tpu7x:2x2x1
jax: 0.10.0
libtpu: 0.0.40
codegen_flags: <defaults>
</compile_context>

<pallas_src>
import functools
import math

import jax
import jax.numpy as jnp
from jax.experimental import pallas as pl
from jax.experimental.pallas import tpu as pltpu


def _round_up(x: int, m: int) -> int:
    return -(-x // m) * m


def _cdiv(x: int, m: int) -> int:
    return -(-x // m)


def _vmem_budget_bytes() -> int:
    """Per-generation VMEM budget: v5e/v6e (128 MiB physical) -> 96 MiB, v7x (64 MiB) -> 48 MiB."""
    try:
        cap = int(pltpu.get_tpu_info().vmem_capacity_bytes)
    except Exception:
        cap = 64 << 20  # conservative fallback, valid on every generation
    return min(cap * 3 // 4, 96 << 20)


# ---------------------------------------------------------------------------
# Pallas kernels
# ---------------------------------------------------------------------------

def _diff_energy_kernel(diff_ref, out_ref, *, loss_norm: int):
    """diff_ref: [TR, E] -> out_ref: [1, 1, TR] (lane-dense row of per-row reductions)."""
    d = diff_ref[...].astype(jnp.float32)        # cast in-register, not in HBM
    s = jnp.abs(d) if loss_norm == 1 else d * d
    ones = jnp.ones((1, s.shape[-1]), jnp.float32)
    # Contract E on the MXU against a ones row (products with 1.0 are exact,
    # accumulation is f32; HIGHEST precision keeps the f32 multi-pass path).
    # Result (1, TR) is lane-dense -> unmasked stores + dense output DMA,
    # and the VPU/XLU slots stay free for the square/abs.
    row = jax.lax.dot_general(
        ones, s,
        dimension_numbers=(((1,), (1,)), ((), ())),
        precision=jax.lax.Precision.HIGHEST,
        preferred_element_type=jnp.float32)      # (1, TR)
    out_ref[0] = row


def _margin_loss_kernel(pos_ref, neg_ref, loss_ref, acc_ref, *, gamma: float):
    """pos_ref: [1, P, 1], neg_ref: [1, 1, TN] -> loss/acc: [1, P, TN] (N lane-dense)."""
    p = pos_ref[0].astype(jnp.float32)           # (P, 1)
    n = neg_ref[0].astype(jnp.float32)           # (1, TN)
    margin = p - n                               # (P, TN): pos[p] - neg[n]
    loss_ref[0] = jnp.maximum(margin + gamma, 0.0)
    # TODO(synk): emit accuracy as int8/bool (or fuse its mean in-kernel) for callers
    # that do not require torch's float32 contract; halves a write-bound kernel's bytes.
    acc_ref[0] = (p < n).astype(jnp.float32)


# ---------------------------------------------------------------------------
# Module wrapper (glue in plain JAX; hot paths inside pallas_call)
# ---------------------------------------------------------------------------

class KnowledgeEmbedding:
    """JAX/Pallas port of pytorch_gleam KnowledgeEmbedding (concrete methods only)."""

    def __init__(self, hidden_size: int, emb_size: int, gamma: float, loss_norm: int = 2):
        self.gamma = float(gamma)
        self.hidden_size = hidden_size
        self.emb_size = emb_size
        self.loss_norm = loss_norm
        # NOTE: the PyTorch __init__ registers no nn.Parameters -> nothing to init.

    # TODO(synk): `forward(source_embeddings, emb_type)`, `energy(head, rel, tail)`
    # and `loss(pos_energy, neg_energy)` are @abstractmethod in the reference
    # module (no bodies to reproduce); intentionally not implemented.

    def diff_energy(self, diff):
        """diff: [..., E] -> energy: [...]  (L1 norm or sum-of-squares over last axis)."""
        if self.loss_norm not in (1, 2):
            raise ValueError(f"Unknown loss norm: {self.loss_norm}")

        lead = diff.shape[:-1]
        E = diff.shape[-1]
        R = math.prod(lead) if lead else 1
        diff2d = jnp.reshape(diff, (R, E))       # no f32 pre-cast, no jnp.pad copy

        itemsize = jnp.dtype(diff.dtype).itemsize
        e_pad = _round_up(E, 128)                # lane padding of the VMEM tile
        budget = _vmem_budget_bytes()
        # One input buffer targets ~8 MiB of *VMEM* footprint (x2 for double-buffering).
        tgt = min(8 << 20, budget // 4)
        tr = max(8, (tgt // (e_pad * itemsize)) // 8 * 8)
        # Give both v7x TensorCores work on mid/large problems (no-op on v5e/v6e).
        tr = min(tr, max(1024, _round_up(_cdiv(R, 2), 8)))
        if tr >= R:
            tr = R
        g = _cdiv(R, tr)
        # TODO(synk): for E << 128 the input vregs are lane-sparse; packing 128/E rows
        # per lane row (block-diagonal ones contraction) would lift VPU lane efficiency.

        out = pl.pallas_call(
            functools.partial(_diff_energy_kernel, loss_norm=self.loss_norm),
            out_shape=jax.ShapeDtypeStruct((g, 1, tr), jnp.float32),
            grid=(g,),
            in_specs=[pl.BlockSpec((tr, E), lambda i: (i, 0))],
            out_specs=pl.BlockSpec((1, 1, tr), lambda i: (i, 0, 0)),
            compiler_params=pltpu.CompilerParams(
                dimension_semantics=("parallel",),
                vmem_limit_bytes=budget),
        )(diff2d)

        flat = jnp.reshape(out, (g * tr,))
        if g * tr != R:
            flat = flat[:R]                      # drop the tail fed by OOB (undefined) rows
        return jnp.reshape(flat, lead)

    def margin_loss(self, pos_energy, neg_energy, *, out_layout: str = "np"):
        """pos_energy: [..., P], neg_energy: [..., N]
        -> (loss, accuracy), each [..., N, P] (torch contract, out_layout="np")
           or the lane-dense fast path [..., P, N] (out_layout="pn")."""
        lead = pos_energy.shape[:-1]
        assert neg_energy.shape[:-1] == lead, "leading dims must match"
        P = pos_energy.shape[-1]
        N = neg_energy.shape[-1]
        B = math.prod(lead) if lead else 1

        pos3 = jnp.reshape(pos_energy, (B, P, 1))     # P on sublanes inside the kernel
        neg3 = jnp.reshape(neg_energy, (B, 1, N))     # N on lanes; no jnp.pad copy

        budget = _vmem_budget_bytes()
        p_pad = _round_up(P, 8)
        # 2 outputs x 2 pipeline buffers of (p_pad, tn) f32 resident in VMEM.
        tn_vmem = (budget // 2) // (4 * p_pad * 4)
        tn_tgt = (4 << 20) // (2 * p_pad * 4)         # ~4 MiB of output per grid step
        tn_split = max(1024, _round_up(_cdiv(N, 2), 128))   # >=2 lane tiles on mid-sized N
        tn = max(128, min(tn_vmem, tn_tgt, tn_split) // 128 * 128)
        if tn >= N:
            tn = N
        grid = (B, _cdiv(N, tn))

        loss_pn, acc_pn = pl.pallas_call(
            functools.partial(_margin_loss_kernel, gamma=self.gamma),
            out_shape=(
                jax.ShapeDtypeStruct((B, P, N), jnp.float32),
                jax.ShapeDtypeStruct((B, P, N), jnp.float32),
            ),
            grid=grid,
            in_specs=[
                pl.BlockSpec((1, P, 1), lambda b, j: (b, 0, 0)),
                pl.BlockSpec((1, 1, tn), lambda b, j: (b, 0, j)),
            ],
            out_specs=(
                pl.BlockSpec((1, P, tn), lambda b, j: (b, 0, j)),
                pl.BlockSpec((1, P, tn), lambda b, j: (b, 0, j)),
            ),
            compiler_params=pltpu.CompilerParams(
                dimension_semantics=("parallel", "parallel"),
                vmem_limit_bytes=budget),
        )(pos3, neg3)

        if out_layout == "pn":                        # lane-dense fast path, zero post-processing
            shape = lead + (P, N)
            return loss_pn.reshape(shape), acc_pn.reshape(shape)

        # torch contract [..., N, P]: this transpose is a full HBM round trip.
        # TODO(synk): fuse the downstream reduction (mean hinge / mean accuracy) into the
        # kernel once the concrete subclass's loss() is known, so neither the transpose
        # nor the [.., N, P] materialization is needed.
        shape = lead + (N, P)
        return (jnp.swapaxes(loss_pn, -1, -2).reshape(shape),
                jnp.swapaxes(acc_pn, -1, -2).reshape(shape))


# ---------------------------------------------------------------------------
# Pure-JAX reference (for correctness check)
# ---------------------------------------------------------------------------

def _ref_diff_energy(diff, loss_norm):
    if loss_norm == 1:
        return jnp.sum(jnp.abs(diff), axis=-1)
    return jnp.sum(diff * diff, axis=-1)


def _ref_margin_loss(pos, neg, gamma):
    pos_b = pos[..., None, :]
    neg_b = neg[..., :, None]
    margin = pos_b - neg_b
    return jnp.maximum(gamma + margin, 0.0), (pos_b < neg_b).astype(jnp.float32)


# ---------------------------------------------------------------------------
# Main
# ---------------------------------------------------------------------------

if __name__ == "__main__":
    key = jax.random.PRNGKey(0)
    k1, k2, k3, k4, k5 = jax.random.split(key, 5)

    B, P, N, E = 2, 8, 128, 32          # batch, #pos energies, #neg energies, emb_size
    gamma = 1.0
    module = KnowledgeEmbedding(hidden_size=E, emb_size=E, gamma=gamma, loss_norm=2)

    pos_diff = jax.random.normal(k1, (B, P, E), dtype=jnp.float32)
    neg_diff = jax.random.normal(k2, (B, N, E), dtype=jnp.float32)

    # diff_energy hot path (reduction over embedding axis) in Pallas
    pos_energy = module.diff_energy(pos_diff)                 # [B, P]
    neg_energy = module.diff_energy(neg_diff)                 # [B, N]
    # margin_loss hot path (broadcast hinge + accuracy) in Pallas; both layouts
    loss, acc = module.margin_loss(pos_energy, neg_energy)                     # torch [B, N, P]
    loss_pn, acc_pn = module.margin_loss(pos_energy, neg_energy, out_layout="pn")  # [B, P, N]
    jax.block_until_ready((pos_energy, neg_energy, loss, acc, loss_pn, acc_pn))

    # Correctness: energies (MXU f32 contraction may reorder sums -> small tolerance)
    assert pos_energy.shape == (B, P) and neg_energy.shape == (B, N)
    assert jnp.allclose(pos_energy, _ref_diff_energy(pos_diff, 2), atol=1e-3, rtol=1e-4)
    assert jnp.allclose(neg_energy, _ref_diff_energy(neg_diff, 2), atol=1e-3, rtol=1e-4)

    # Correctness: margin loss / accuracy vs reference on the same energies
    ref_loss, ref_acc = _ref_margin_loss(pos_energy, neg_energy, gamma)
    assert loss.shape == (B, N, P) and acc.shape == (B, N, P)
    assert jnp.allclose(loss, ref_loss, atol=1e-5, rtol=1e-5)
    assert jnp.array_equal(acc, ref_acc)
    assert jnp.allclose(loss_pn, jnp.swapaxes(ref_loss, -1, -2), atol=1e-5, rtol=1e-5)
    assert jnp.array_equal(acc_pn, jnp.swapaxes(ref_acc, -1, -2))

    # L1 (loss_norm=1) path of diff_energy
    module_l1 = KnowledgeEmbedding(hidden_size=E, emb_size=E, gamma=gamma, loss_norm=1)
    e_l1 = module_l1.diff_energy(pos_diff)
    jax.block_until_ready(e_l1)
    assert jnp.allclose(e_l1, _ref_diff_energy(pos_diff, 1), atol=1e-3, rtol=1e-4)

    # Multi-tile + ragged (cdiv) paths: R and N not multiples of the chosen tiles.
    big_diff = jax.random.normal(k3, (3, 1100, E), dtype=jnp.float32)   # R=3300, 2 row tiles
    e_big = module.diff_energy(big_diff)
    big_pos = jax.random.normal(k4, (B, P), dtype=jnp.float32)
    big_neg = jax.random.normal(k5, (B, 2300), dtype=jnp.float32)       # N=2300, 2 lane tiles
    l_big, a_big = module.margin_loss(big_pos, big_neg)
    jax.block_until_ready((e_big, l_big, a_big))

    assert jnp.allclose(e_big, _ref_diff_energy(big_diff, 2), atol=1e-3, rtol=1e-4)
    rl, ra = _ref_margin_loss(big_pos, big_neg, gamma)
    assert l_big.shape == (B, 2300, P)
    assert jnp.allclose(l_big, rl, atol=1e-5, rtol=1e-5)
    assert jnp.array_equal(a_big, ra)

    print("KERNEL_OK")
</pallas_src>

<mosaic_0001>
module attributes {stable_mosaic.version = 11 : i64} {
  func.func @_diff_energy_kernel(%arg0: i32, %arg1: memref<16x32xf32, #tpu.memory_space<vmem>>, %arg2: memref<1x1x16xf32, #tpu.memory_space<vmem>>) attributes {dimension_semantics = [#tpu.dimension_semantics<parallel>], iteration_bounds = array<i64: 1>, scalar_prefetch = 0 : i64, scratch_operands = 0 : i64, tpu.core_type = #tpu.core_type<tc>, window_params = [{transform_indices = @transform_0, window_bounds = array<i64: 16, 32>}, {transform_indices = @transform_1, window_bounds = array<i64: 1, 1, 16>}]} {
    %c0 = arith.constant 0 : index
    %c0_0 = arith.constant 0 : index
    %0 = vector.load %arg1[%c0, %c0_0] : memref<16x32xf32, #tpu.memory_space<vmem>>, vector<16x32xf32>
    %1 = arith.mulf %0, %0 : vector<16x32xf32>
    %cst = arith.constant 1.000000e+00 : f32
    %2 = vector.broadcast %cst : f32 to vector<1x32xf32>
    %cst_1 = arith.constant dense<0.000000e+00> : vector<1x16xf32>
    %3 = tpu.matmul %2, %1, %cst_1 {dimension_numbers = #tpu.dot_dimension_numbers<[1], [1], [0], [0], [0, 0, 1, 0], [], []>, precision = #tpu.contract_precision<fp32>} : vector<1x32xf32>, vector<16x32xf32>, vector<1x16xf32> -> vector<1x16xf32>
    %c0_2 = arith.constant 0 : index
    %c0_3 = arith.constant 0 : index
    %c0_4 = arith.constant 0 : index
    %4 = vector.load %arg2[%c0_2, %c0_3, %c0_4] : memref<1x1x16xf32, #tpu.memory_space<vmem>>, vector<1x1x16xf32>
    %5 = vector.shape_cast %4 : vector<1x1x16xf32> to vector<1x16xf32>
    %6 = vector.shape_cast %3 : vector<1x16xf32> to vector<1x1x16xf32>
    tpu.vector_store %arg2[%c0_2, %c0_3, %c0_4], %6 {strides = array<i32>} : memref<1x1x16xf32, #tpu.memory_space<vmem>>, vector<1x1x16xf32>,
    return
  }
  func.func @transform_0(%arg0: i32) -> (i32, i32) {
    %c0_i32 = arith.constant 0 : i32
    %c0_i32_0 = arith.constant 0 : i32
    return %arg0, %c0_i32 : i32, i32
  }
  func.func @transform_1(%arg0: i32) -> (i32, i32, i32) {
    %c0_i32 = arith.constant 0 : i32
    %c0_i32_0 = arith.constant 0 : i32
    %c0_i32_1 = arith.constant 0 : i32
    return %arg0, %c0_i32, %c0_i32_0 : i32, i32, i32
  }
}

</mosaic_0001>

<bundles_post_ra>
// kernel: tpu_custom_call.1
= control target key start
LH: loop header
LB: loop body
LE: loop exit
PB: predicated region body
PF: predicated region fallthrough
CT: control target
= control target key end

     0   :  { %6 = vsyncpa [#allocation3], 0  ;;  %s715_s0 = inlined_call_operand.hbm [shape: f32[16,32], index: 0, kind: input, shape index: {}]   ;;  %s716_s1 = inlined_call_operand.hbm [shape: f32[1,1,16], index: 1, kind: output, shape index: {}]  }
   0x1   :  { %7 = vsyncpa [#allocation4], 0  ;;  %s660_s6 = smov [#allocation2]   ;;  %s612_s10 = scalar_lea.hbm %s715_s0, 256 }
   0x2   :  { %s13_s7 = sshll.u32 %s660_s6, 4  ;;  %p613_p0 = scmp.ne.s32.totalorder %s715_s0, %s612_s10  ;;  %s14_s7 = int_to_ptr.vmem [resolvable:$true] %s13_s7 }
   0x3   :  { %p616_p1 = scmp.lt.u32.totalorder %s612_s10, %s715_s0 }
   0x5   :  { %p618_p2 = pnand %p616_p1, %p613_p0 }
   0x7   :  { %621 = shalt.err (!%p618_p2)
}
   0x8   :  { %s622_s15 = scalar_lea.vmem %s14_s7, 256  ;;  %p627_p4 = scmp.lt.s32.totalorder %s14_s7, %s14_s7 }
   0x9   :  { %p623_p3 = scmp.ne.s32.totalorder %s14_s7, %s622_s15  ;;  %p628_p5 = scmp.lt.s32.totalorder %s622_s15, %s622_s15 }
   0xb   :  { %p629_p6 = por %p628_p5, %p627_p4 }
   0xd   :  { %p630_p7 = pnand %p629_p6, %p623_p3 }
   0xf   :  { %633 = shalt.err (!%p630_p7)
}
  0x10   :  { %s661_s16 = smov 128   ;;  %s662_s17 = smov 8  }
  0x11   :  { %19 = dma.hbm_to_vmem [thread:$0]  %s715_s0, 256, %s14_s7, [#allocation3], %s661_s16, %s661_s16, %s662_s17  }
  0x12   :  { %656 = dma.done.wait [#allocation3], 256  }
  0x13   :  { %657 = vsyncadd [#allocation3], 4294967040  ;;  %v663_v0 = vmov 0.0|0.0   ;;  %vm27_vm0 = vcmask 261120   ;;  %vm664_vm1 = vmmov 0   ;;  %v665_v1 = vmov 0.0  }
  0x14   :  { %576 = vmatprep.subr.bf16.mxu1 %v663_v0  ;;  %585 = vmatprep.subr.bf16.mxu0 %v663_v0  ;;  %v666_v2 = vmov 0   ;;  %v23_v5 = vld [vmem:[#allocation2] sm:$0xff]  ;;  %v24_v6 = vld [vmem:[#allocation2 + $0x8] sm:$0xff]  ;;  %v667_v28 = vmov 1.0   ;;  %s668_s0 = smov [#allocation5]   ;;  %vm496_vm2 = vcmask 122880  }
  0x15   :  { %538 = vmatprep.mubr.msk.f32.mxu1 %vm664_vm1, %v665_v1  ;;  %559 = vmatprep.mubr.msk.f32.mxu0 %vm664_vm1, %v665_v1  ;;  %v29_v3 = vsel %vm27_vm0, 1.0, %v666_v2  ;;  %v25_v7 = vmul.f32 %v23_v5, %v23_v5  ;;  %v26_v8 = vmul.f32 %v24_v6, %v24_v6  ;;  %s504_s20 = sshll.u32 %s668_s0, 4  ;;  %s505_s20 = int_to_ptr.vmem [resolvable:$true] %s504_s20 }
  0x16   :  { %v105_v4 = vsub.f32 %v29_v3, %v29_v3  ;;  %s634_s21 = scalar_lea.vmem %s505_s20, 16  ;;  %s638_s22 = scalar_lea.vmem %s505_s20, 32 }
  0x17   :  { %v32_v9 = vsel %vm27_vm0, %v25_v7, 0  ;;  %v35_v10 = vsel %vm27_vm0, %v26_v8, 0  ;;  %p635_p8 = scmp.ne.s32.totalorder %s505_s20, %s634_s21  ;;  %p639_p9 = scmp.lt.s32.totalorder %s505_s20, %s505_s20 }
  0x18   :  { %v106_v11 = vand.u32 4294901760, %v105_v4  ;;  %v38_v12 = vand.u32 4294901760, %v32_v9  ;;  %v41_v13 = vand.u32 4294901760, %v35_v10  ;;  %p640_p10 = scmp.lt.s32.totalorder %s638_s22, %s634_s21 }
  0x1a   :  { %v577_v14 = vpack.c.bf16 %v41_v13, %v38_v12  ;;  %v116_v15 = vsub.f32 %v32_v9, %v38_v12  ;;  %v123_v16 = vsub.f32 %v35_v10, %v41_v13  ;;  %v107_v17 = vsub.f32 %v105_v4, %v106_v11  ;;  %p641_p11 = por %p640_p10, %p639_p9 }
  0x1c   :  { %578 = vmatpush3.bf16.xpose.msra.mxu1 %v577_v14  ;;  %587 = vmatpush3.bf16.xpose.msra.mxu0 %v577_v14  ;;  %v117_v18 = vand.u32 4294901760, %v116_v15  ;;  %v124_v19 = vand.u32 4294901760, %v123_v16  ;;  %v108_v22 = vand.u32 4294901760, %v107_v17  ;;  %v583_v27 = vpack.c.bf16 %v123_v16, %v116_v15  ;;  %p642_p12 = pnand %p641_p11, %p635_p8 }
  0x1d   :  { %579 = vmatprep.subr.bf16.mxu1 %v663_v0  ;;  %588 = vmatprep.subr.bf16.mxu0 %v663_v0 }
  0x1e   :  { %v118_v20 = vsub.f32 %v116_v15, %v117_v18  ;;  %v125_v21 = vsub.f32 %v123_v16, %v124_v19  ;;  %v589_v25 = vpack.c.bf16 %v124_v19, %v117_v18 }
  0x20   :  { %v119_v23 = vand.u32 4294901760, %v118_v20  ;;  %v126_v24 = vand.u32 4294901760, %v125_v21 }
  0x22   :  { %v580_v26 = vpack.c.bf16 %v126_v24, %v119_v23 }
  0x23   :  { %539 = vmatmul.mubr.f32.vlgmr.msra.gmra.mrb[0].mxu1 %v108_v22  ;;  %560 = vmatmul.mubr.f32.vlgmr.msra.gmra.mrb[0].mxu0 %v106_v11 }
  0x24   :  { %581 = vmatpush3.bf16.xpose.msra.mxu1 %v580_v26  ;;  %590 = vmatpush3.bf16.xpose.msra.mxu0 %v589_v25 }
  0x25   :  { %545 = vmatprep.mubr.msk.f32.mxu1 %vm664_vm1, %v665_v1  ;;  %566 = vmatprep.mubr.msk.f32.mxu0 %vm664_vm1, %v665_v1 }
  0x26   :  { %582 = vmatprep.subr.bf16.mxu1 %v663_v0  ;;  %591 = vmatprep.subr.bf16.mxu0 %v663_v0 }
  0x2b   :  { %546 = vmatmul.mubr.msk.f32.vlgmr.msra.gmra.mrb[0].mxu1 %vm27_vm0, %v667_v28  ;;  %567 = vmatmul.mubr.msk.f32.vlgmr.msra.gmra.mrb[0].mxu0 %vm27_vm0, %v667_v28 }
  0x2c   :  { %584 = vmatpush3.bf16.xpose.msra.mxu1 %v583_v27  ;;  %593 = vmatpush3.bf16.xpose.msra.mxu0 %v577_v14 }
  0x2d   :  { %552 = vmatprep.mubr.msk.f32.mxu1 %vm664_vm1, %v665_v1  ;;  %573 = vmatprep.mubr.msk.f32.mxu0 %vm664_vm1, %v665_v1 }
  0x33   :  { %553 = vmatmul.mubr.f32.vlgmr.msra.gmra.mrb[0].mxu1 %v105_v4  ;;  %574 = vmatmul.mubr.msk.f32.vlgmr.msra.gmra.mrb[0].mxu0 %vm27_vm0, %v667_v28 }
 0x106   :  { %v267_v29 = vpop.f32.mrb[0].mxu1  ;;  %v492_v30 = vpop.f32.mrb[0].mxu0 }
 0x107   :  { %v594_v31 = vadd.f32 %v492_v30, %v267_v29  ;;  %v554_v32 = vpop.f32.mrb[1].mxu1  ;;  %v575_v33 = vpop.f32.mrb[1].mxu0 }
 0x109   :  { %497 = vst.msk [vmem:[#allocation5] sm:$0x1] %vm496_vm2, %v594_v31 }
 0x10a   :  { %645 = shalt.err (!%p642_p12)
}
 0x10b   :  { %s646_s25 = scalar_lea.hbm %s716_s1, 16 }
 0x10c   :  { %p647_p13 = scmp.ne.s32.totalorder %s716_s1, %s646_s25  ;;  %p650_p0 = scmp.lt.u32.totalorder %s646_s25, %s716_s1 }
 0x10e   :  { %p652_p1 = pnand %p650_p0, %p647_p13 }
 0x110   :  { %655 = shalt.err (!%p652_p1)
}
 0x111   :  { %507 = dma.vmem_to_hbm [thread:$0]  %s505_s20, 16, %s716_s1, [#allocation4]  }
 0x112   :  { %658 = dma.done.wait [#allocation4], 16  }
 0x113   :  { %659 = vsyncadd [#allocation4], 4294967280 }
 0x114   :  { %511 = vsyncpa [#allocation3], 1 }
 0x115   :  { %512 = vsyncpa [#allocation4], 1 }

</bundles_post_ra>
